<compile_context>
chip_gen: v5e
topology: v5e:2x2
jax: 0.10.0
libtpu: 0.0.40
codegen_flags: <defaults>
</compile_context>

<pallas_src>
import jax
import jax.numpy as jnp
from jax.experimental import pallas as pl
from jax.experimental.pallas import tpu as pltpu


def _round_up(x: int, m: int) -> int:
    return ((x + m - 1) // m) * m


def _per_molecule_sq_err_kernel(tile_min_ref, tile_max_ref,          # scalar prefetch (SMEM)
                                pred_ref, ref_ref, idx_ref, inv_scale_ref,
                                out_ref, acc_ref):
    j = pl.program_id(0)          # molecule block (parallel)
    k = pl.program_id(1)          # atom tile (reduction, arbitrary)
    mol_block = acc_ref.shape[1]
    mol_start = j * mol_block

    @pl.when(k == 0)
    def _init():
        acc_ref[...] = jnp.zeros_like(acc_ref)

    # Skip atom tiles whose molecule-index range does not touch this block.
    overlap = jnp.logical_and(tile_max_ref[k] >= mol_start,
                              tile_min_ref[k] < mol_start + mol_block)

    @pl.when(overlap)
    def _compute():
        # (D, T) squared difference in f32, lane-dense over atoms.
        diff = pred_ref[...].astype(jnp.float32) - ref_ref[...].astype(jnp.float32)
        sq = diff * diff                                              # (D, T) f32

        # Split f32 into a bf16-representable hi part and a residual lo part,
        # stacked along D, so one bf16 MXU pass against the same one-hot
        # recovers ~f32 accuracy (one-hot values {0,1} are exact in bf16).
        sq_hi = sq.astype(jnp.bfloat16).astype(jnp.float32)
        sq_lo = sq - sq_hi
        sq_split = jnp.concatenate([sq_hi, sq_lo], axis=0).astype(jnp.bfloat16)  # (2D, T)

        # One-hot membership for this (molecule block, atom tile) cell.
        # Tiny (mol_block, 1) iota broadcast against the (1, T) index row; the
        # compare/select runs in int32/f32 (v5e has no bf16 VALU) and only the
        # final one-hot is cast to bf16 for the MXU.  Padded atoms carry
        # index -1 and never match.
        idx_local = idx_ref[...] - mol_start                          # (1, T)
        mol_iota = jax.lax.broadcasted_iota(jnp.int32, (mol_block, 1), 0)
        onehot = jnp.where(mol_iota == idx_local,
                           jnp.float32(1.0), jnp.float32(0.0)).astype(jnp.bfloat16)

        # Fused feature-reduction + segment-sum on the MXU: contract the atom
        # axis of both operands -> (2D, mol_block), accumulate in f32.
        per_mol_d = jax.lax.dot_general(
            sq_split, onehot, (((1,), (1,)), ((), ())),
            preferred_element_type=jnp.float32)

        # Cheap sublane reduce over 2D; accumulate lane-dense (1, mol_block).
        acc_ref[...] += jnp.sum(per_mol_d, axis=0, keepdims=True)

    @pl.when(k == pl.num_programs(1) - 1)
    def _finalize():
        out_ref[...] = (acc_ref[...] * inv_scale_ref[...]).astype(out_ref.dtype)


def _vmem_budget_bytes() -> int:
    # Generation-aware working-set budget: v5e/v6e have 128 MiB physical VMEM,
    # v7x only 64 MiB (32 MiB scoped default) -> keep the per-tile set small.
    try:
        cap = int(pltpu.get_tpu_info().vmem_capacity_bytes)
    except Exception:  # conservative fallback if the query is unavailable
        cap = 64 * 1024 * 1024
    return min(cap // 4, 16 * 1024 * 1024)


def _choose_tiles(n_atoms: int, n_molecules: int, d_feat: int):
    mol_block = 128 if n_molecules <= 128 else 256
    m_pad = _round_up(n_molecules, mol_block)
    # Per-atom-column bytes: bf16 one-hot row + double-buffered f32 pred/ref
    # streams + int32 idx + slack for the f32/bf16 sq temporaries.
    per_atom_bytes = mol_block * 2 + 2 * 2 * d_feat * 4 + 2 * 4 + 8 * d_feat
    max_tile = max(128, (_vmem_budget_bytes() // per_atom_bytes) // 128 * 128)
    # Big tiles amortize the ~0.35 us per-grid-step overhead.
    atom_tile = min(8192, max_tile, _round_up(n_atoms, 128))
    return max(128, atom_tile), mol_block, m_pad


def from_per_atom_to_per_molecule_squared_error(
    per_atom_prediction: jax.Array,        # (N_atoms, D)
    per_atom_reference: jax.Array,         # (N_atoms, D)
    atomic_subsystem_indices: jax.Array,   # (N_atoms,) int  (molecule id per atom)
    atomic_subsystem_counts: jax.Array,    # (N_molecules,)  (atoms per molecule)
    n_molecules: int,
) -> jax.Array:                            # (N_molecules, 1) float32
    n_atoms, d_feat = per_atom_prediction.shape
    atom_tile, mol_block, m_pad = _choose_tiles(n_atoms, n_molecules, d_feat)
    n_pad = _round_up(n_atoms, atom_tile)
    n_tiles = n_pad // atom_tile
    pad_atoms = n_pad - n_atoms

    # Lane-dense (D, N_pad) layout via a single fused pad of the transpose.
    # TODO(synk): if the caller stores per-atom tensors as (D, N) natively the
    # transpose (one HBM pass per tensor) disappears entirely.
    pred_t = jnp.pad(per_atom_prediction.T, ((0, 0), (0, pad_atoms)))
    ref_t = jnp.pad(per_atom_reference.T, ((0, 0), (0, pad_atoms)))

    # Padded atoms get molecule index -1: they can never match any molecule.
    idx_i32 = atomic_subsystem_indices.astype(jnp.int32)
    idx_row = jnp.pad(idx_i32, (0, pad_atoms), constant_values=-1)[None, :]

    # Per-atom-tile molecule-index range (scalar-prefetched) for tile skipping.
    idx_for_min = jnp.pad(idx_i32, (0, pad_atoms), constant_values=2 ** 30)
    idx_for_max = jnp.pad(idx_i32, (0, pad_atoms), constant_values=-1)
    tile_min = idx_for_min.reshape(n_tiles, atom_tile).min(axis=1)
    tile_max = idx_for_max.reshape(n_tiles, atom_tile).max(axis=1)

    # Precompute 1 / (D * counts); padded molecules get 0 (sliced away below).
    # counts == 0 yields inf, matching the torch module (error / 0).
    # Indices outside [0, n_molecules) fall into padded molecules and are
    # dropped (torch.scatter_add_ would raise); inputs are assumed validated.
    counts_f = atomic_subsystem_counts.astype(jnp.float32)
    inv_scale = jnp.pad(1.0 / (jnp.float32(d_feat) * counts_f),
                        (0, m_pad - n_molecules))[None, :]

    out_row = pl.pallas_call(
        _per_molecule_sq_err_kernel,
        out_shape=jax.ShapeDtypeStruct((1, m_pad), jnp.float32),
        grid_spec=pltpu.PrefetchScalarGridSpec(
            num_scalar_prefetch=2,
            grid=(m_pad // mol_block, n_tiles),
            in_specs=[
                pl.BlockSpec((d_feat, atom_tile), lambda j, k, tmin, tmax: (0, k)),
                pl.BlockSpec((d_feat, atom_tile), lambda j, k, tmin, tmax: (0, k)),
                pl.BlockSpec((1, atom_tile), lambda j, k, tmin, tmax: (0, k)),
                pl.BlockSpec((1, mol_block), lambda j, k, tmin, tmax: (0, j)),
            ],
            out_specs=pl.BlockSpec((1, mol_block), lambda j, k, tmin, tmax: (0, j)),
            scratch_shapes=[pltpu.VMEM((1, mol_block), jnp.float32)],
        ),
        compiler_params=pltpu.CompilerParams(
            # Molecule blocks are independent -> "parallel" (v7x uses both TCs);
            # the atom axis is a reduction -> "arbitrary".
            dimension_semantics=("parallel", "arbitrary"),
            vmem_limit_bytes=32 * 1024 * 1024,
        ),
    )(tile_min, tile_max, pred_t, ref_t, idx_row, inv_scale)

    return out_row[0, :n_molecules].reshape(n_molecules, 1)


def _reference(pred, ref, idx, counts, n_mols):
    per_atom = jnp.sum((pred - ref) ** 2, axis=1)                     # (N,)
    per_mol = jax.ops.segment_sum(per_atom, idx, num_segments=n_mols)[:, None]
    return per_mol / (pred.shape[-1] * counts.astype(per_mol.dtype)[:, None])


if __name__ == "__main__":
    key = jax.random.PRNGKey(0)
    k1, k2 = jax.random.split(key)

    n_molecules = 4
    counts = jnp.array([3, 5, 2, 6], dtype=jnp.int32)   # atoms per molecule
    n_atoms = int(counts.sum())                          # 16
    d_feat = 3                                           # e.g. per-atom forces

    per_atom_prediction = jax.random.normal(k1, (n_atoms, d_feat), dtype=jnp.float32)
    per_atom_reference = jax.random.normal(k2, (n_atoms, d_feat), dtype=jnp.float32)
    atomic_subsystem_indices = jnp.repeat(
        jnp.arange(n_molecules, dtype=jnp.int32), counts, total_repeat_length=n_atoms
    )

    out = from_per_atom_to_per_molecule_squared_error(
        per_atom_prediction,
        per_atom_reference,
        atomic_subsystem_indices,
        counts,
        n_molecules,
    )
    out = jax.block_until_ready(out)

    expected = _reference(
        per_atom_prediction, per_atom_reference, atomic_subsystem_indices,
        counts, n_molecules,
    )
    assert out.shape == (n_molecules, 1)
    # hi/lo bf16 split keeps ~f32 accuracy (~5e-6 relative); allow small margin.
    assert jnp.allclose(out, expected, rtol=1e-4, atol=1e-5), (out, expected)
    print("KERNEL_OK")
</pallas_src>

<mosaic_0001>
module attributes {stable_mosaic.version = 11 : i64} {
  func.func @_per_molecule_sq_err_kernel(%arg0: i32, %arg1: i32, %arg2: memref<1xi32, #tpu.memory_space<smem>>, %arg3: memref<1xi32, #tpu.memory_space<smem>>, %arg4: memref<3x128xf32, #tpu.memory_space<vmem>>, %arg5: memref<3x128xf32, #tpu.memory_space<vmem>>, %arg6: memref<1x128xi32, #tpu.memory_space<vmem>>, %arg7: memref<1x128xf32, #tpu.memory_space<vmem>>, %arg8: memref<1x128xf32, #tpu.memory_space<vmem>>, %arg9: memref<1x128xf32, #tpu.memory_space<vmem>>) attributes {dimension_semantics = [#tpu.dimension_semantics<parallel>, #tpu.dimension_semantics<arbitrary>], iteration_bounds = array<i64: 1, 1>, scalar_prefetch = 2 : i64, scratch_operands = 1 : i64, tpu.core_type = #tpu.core_type<tc>, window_params = [{transform_indices = @transform_0, window_bounds = array<i64: 3, 128>}, {transform_indices = @transform_1, window_bounds = array<i64: 3, 128>}, {transform_indices = @transform_2, window_bounds = array<i64: 1, 128>}, {transform_indices = @transform_3, window_bounds = array<i64: 1, 128>}, {transform_indices = @transform_4, window_bounds = array<i64: 1, 128>}]} {
    %c128_i32 = arith.constant 128 : i32
    %0 = arith.muli %arg0, %c128_i32 : i32
    %c0_i32 = arith.constant 0 : i32
    %1 = arith.cmpi eq, %arg1, %c0_i32 : i32
    %2 = arith.extui %1 : i1 to i32
    %c0_i32_0 = arith.constant 0 : i32
    %3 = arith.cmpi ne, %2, %c0_i32_0 : i32
    scf.if %3 {
      %cst = arith.constant 0.000000e+00 : f32
      %17 = vector.broadcast %cst : f32 to vector<1x128xf32>
      %c0 = arith.constant 0 : index
      %c0_5 = arith.constant 0 : index
      %18 = vector.load %arg9[%c0, %c0_5] : memref<1x128xf32, #tpu.memory_space<vmem>>, vector<1x128xf32>
      tpu.vector_store %arg9[%c0, %c0_5], %17 {strides = array<i32>} : memref<1x128xf32, #tpu.memory_space<vmem>>, vector<1x128xf32>,
    } else {
    }
    %4 = arith.index_cast %arg1 : i32 to index
    %5 = memref.load %arg3[%4] : memref<1xi32, #tpu.memory_space<smem>>
    %6 = arith.cmpi sge, %5, %0 : i32
    %7 = arith.index_cast %arg1 : i32 to index
    %8 = memref.load %arg2[%7] : memref<1xi32, #tpu.memory_space<smem>>
    %c128_i32_1 = arith.constant 128 : i32
    %9 = arith.addi %0, %c128_i32_1 : i32
    %10 = arith.cmpi slt, %8, %9 : i32
    %11 = arith.andi %6, %10 : i1
    %12 = arith.extui %11 : i1 to i32
    %c0_i32_2 = arith.constant 0 : i32
    %13 = arith.cmpi ne, %12, %c0_i32_2 : i32
    scf.if %13 {
      %c0 = arith.constant 0 : index
      %c0_5 = arith.constant 0 : index
      %17 = vector.load %arg4[%c0, %c0_5] : memref<3x128xf32, #tpu.memory_space<vmem>>, vector<3x128xf32>
      %c0_6 = arith.constant 0 : index
      %c0_7 = arith.constant 0 : index
      %18 = vector.load %arg5[%c0_6, %c0_7] : memref<3x128xf32, #tpu.memory_space<vmem>>, vector<3x128xf32>
      %19 = arith.subf %17, %18 : vector<3x128xf32>
      %20 = arith.mulf %19, %19 : vector<3x128xf32>
      %21 = arith.truncf %20 : vector<3x128xf32> to vector<3x128xbf16>
      %22 = arith.extf %21 : vector<3x128xbf16> to vector<3x128xf32>
      %23 = arith.subf %20, %22 : vector<3x128xf32>
      %24 = tpu.concatenate %22, %23 in 0 : vector<3x128xf32>, vector<3x128xf32> -> vector<6x128xf32>
      %25 = arith.truncf %24 : vector<6x128xf32> to vector<6x128xbf16>
      %c0_8 = arith.constant 0 : index
      %c0_9 = arith.constant 0 : index
      %26 = vector.load %arg6[%c0_8, %c0_9] : memref<1x128xi32, #tpu.memory_space<vmem>>, vector<1x128xi32>
      %27 = vector.broadcast %0 : i32 to vector<1x128xi32>
      %28 = arith.subi %26, %27 : vector<1x128xi32>
      %29 = tpu.iota {dimensions = array<i32: 0>} : vector<128x1xi32>
      %30 = vector.broadcast %29 : vector<128x1xi32> to vector<128x128xi32>
      %31 = vector.broadcast %28 : vector<1x128xi32> to vector<128x128xi32>
      %32 = arith.cmpi eq, %30, %31 : vector<128x128xi32>
      %cst = arith.constant 1.000000e+00 : f32
      %cst_10 = arith.constant 0.000000e+00 : f32
      %33 = vector.broadcast %cst : f32 to vector<128x128xf32>
      %34 = vector.broadcast %cst_10 : f32 to vector<128x128xf32>
      %35 = arith.select %32, %33, %34 : vector<128x128xi1>, vector<128x128xf32>
      %36 = arith.truncf %35 : vector<128x128xf32> to vector<128x128xbf16>
      %cst_11 = arith.constant dense<0.000000e+00> : vector<6x128xf32>
      %37 = tpu.matmul %25, %36, %cst_11 {dimension_numbers = #tpu.dot_dimension_numbers<[1], [1], [0], [0], [0, 0, 1, 0], [], []>} : vector<6x128xbf16>, vector<128x128xbf16>, vector<6x128xf32> -> vector<6x128xf32>
      %c0_12 = arith.constant 0 : index
      %c0_13 = arith.constant 0 : index
      %38 = vector.load %arg9[%c0_12, %c0_13] : memref<1x128xf32, #tpu.memory_space<vmem>>, vector<1x128xf32>
      %cst_14 = arith.constant dense<0.000000e+00> : vector<128xf32>
      %39 = vector.multi_reduction <add>, %37, %cst_14 [0] : vector<6x128xf32> to vector<128xf32>
      %40 = vector.shape_cast %39 : vector<128xf32> to vector<1x128xf32>
      %41 = arith.addf %38, %40 : vector<1x128xf32>
      %c0_15 = arith.constant 0 : index
      %c0_16 = arith.constant 0 : index
      %42 = vector.load %arg9[%c0_15, %c0_16] : memref<1x128xf32, #tpu.memory_space<vmem>>, vector<1x128xf32>
      tpu.vector_store %arg9[%c0_15, %c0_16], %41 {strides = array<i32>} : memref<1x128xf32, #tpu.memory_space<vmem>>, vector<1x128xf32>,
    } else {
    }
    %c0_i32_3 = arith.constant 0 : i32
    %14 = arith.cmpi eq, %arg1, %c0_i32_3 : i32
    %15 = arith.extui %14 : i1 to i32
    %c0_i32_4 = arith.constant 0 : i32
    %16 = arith.cmpi ne, %15, %c0_i32_4 : i32
    scf.if %16 {
      %c0 = arith.constant 0 : index
      %c0_5 = arith.constant 0 : index
      %17 = vector.load %arg9[%c0, %c0_5] : memref<1x128xf32, #tpu.memory_space<vmem>>, vector<1x128xf32>
      %c0_6 = arith.constant 0 : index
      %c0_7 = arith.constant 0 : index
      %18 = vector.load %arg7[%c0_6, %c0_7] : memref<1x128xf32, #tpu.memory_space<vmem>>, vector<1x128xf32>
      %19 = arith.mulf %17, %18 : vector<1x128xf32>
      %c0_8 = arith.constant 0 : index
      %c0_9 = arith.constant 0 : index
      %20 = vector.load %arg8[%c0_8, %c0_9] : memref<1x128xf32, #tpu.memory_space<vmem>>, vector<1x128xf32>
      tpu.vector_store %arg8[%c0_8, %c0_9], %19 {strides = array<i32>} : memref<1x128xf32, #tpu.memory_space<vmem>>, vector<1x128xf32>,
    } else {
    }
    return
  }
  func.func @transform_0(%arg0: i32, %arg1: i32, %arg2: memref<1xi32, #tpu.memory_space<smem>>, %arg3: memref<1xi32, #tpu.memory_space<smem>>) -> (i32, i32) {
    %c0_i32 = arith.constant 0 : i32
    %c0_i32_0 = arith.constant 0 : i32
    return %c0_i32, %arg1 : i32, i32
  }
  func.func @transform_1(%arg0: i32, %arg1: i32, %arg2: memref<1xi32, #tpu.memory_space<smem>>, %arg3: memref<1xi32, #tpu.memory_space<smem>>) -> (i32, i32) {
    %c0_i32 = arith.constant 0 : i32
    %c0_i32_0 = arith.constant 0 : i32
    return %c0_i32, %arg1 : i32, i32
  }
  func.func @transform_2(%arg0: i32, %arg1: i32, %arg2: memref<1xi32, #tpu.memory_space<smem>>, %arg3: memref<1xi32, #tpu.memory_space<smem>>) -> (i32, i32) {
    %c0_i32 = arith.constant 0 : i32
    %c0_i32_0 = arith.constant 0 : i32
    return %c0_i32, %arg1 : i32, i32
  }
  func.func @transform_3(%arg0: i32, %arg1: i32, %arg2: memref<1xi32, #tpu.memory_space<smem>>, %arg3: memref<1xi32, #tpu.memory_space<smem>>) -> (i32, i32) {
    %c0_i32 = arith.constant 0 : i32
    %c0_i32_0 = arith.constant 0 : i32
    return %c0_i32, %arg0 : i32, i32
  }
  func.func @transform_4(%arg0: i32, %arg1: i32, %arg2: memref<1xi32, #tpu.memory_space<smem>>, %arg3: memref<1xi32, #tpu.memory_space<smem>>) -> (i32, i32) {
    %c0_i32 = arith.constant 0 : i32
    %c0_i32_0 = arith.constant 0 : i32
    return %c0_i32, %arg0 : i32, i32
  }
}

</mosaic_0001>

<bundles_post_ra>
// kernel: tpu_custom_call.1
= control target key start
LH: loop header
LB: loop body
LE: loop exit
PB: predicated region body
PF: predicated region fallthrough
CT: control target
= control target key end

     0   :  { %13 = vsyncpa [#allocation7], 0  ;;  %s306_s0 = inlined_call_operand.<no memory space> [shape: s32[1], index: 0, kind: input, shape index: {}]   ;;  %s307_s1 = inlined_call_operand.<no memory space> [shape: s32[1], index: 1, kind: input, shape index: {}]   ;;  %s308_s2 = inlined_call_operand.vmem [shape: f32[3,128], index: 2, kind: input, shape index: {}]   ;;  %s309_s3 = inlined_call_operand.hbm [shape: f32[3,128], index: 3, kind: input, shape index: {}]   ;;  %s310_s4 = inlined_call_operand.vmem [shape: s32[1,128], index: 4, kind: input, shape index: {}]   ;;  %s311_s5 = inlined_call_operand.vmem [shape: f32[1,128], index: 5, kind: input, shape index: {}]   ;;  %s312_s6 = inlined_call_operand.hbm [shape: f32[1,128], index: 6, kind: output, shape index: {}]  }
   0x1   :  { %14 = vsyncpa [#allocation8], 0  ;;  %s22_s23 = sshll.u32 %s309_s3, 4  ;;  %s246_s24 = smov [#allocation6]   ;;  %s23_s23 = int_to_ptr.hbm [resolvable:$true] %s22_s23 }
   0x2   :  { %s24_s25 = sshll.u32 %s246_s24, 4  ;;  %s25_s25 = int_to_ptr.vmem [resolvable:$true] %s24_s25 }
   0x3   :  { %27 = dma.hbm_to_vmem [thread:$0]  %s23_s23, 64, %s25_s25, [#allocation7]  }
   0x4   :  { %242 = dma.done.wait [#allocation7], 64  }
   0x5   :  { %243 = vsyncadd [#allocation7], 4294967232  ;;  %p43_p0 = scmp.ge.s32.totalorder %s307_s1, 0  ;;  %p46_p1 = scmp.lt.s32.totalorder %s306_s0, 128  ;;  %v247_v0 = vmov 0.0  }
   0x6   :  { %41 = vst [vmem:[#allocation2] sm:$0x1] %v247_v0 }
   0x7   :  { %p47_p2 = pnand %p46_p1, %p43_p0 }
   0x9   :  { %50 = sbr.rel (%p47_p2) target bundleno = 227 (0xe3), region = 29 }
   0xe   :  { %v67_v1 = vlaneseq  ;;  %v193_v3 = vld [vmem:[%s310_s4] ss:$0 sm:$0xff]  ;;  %v248_v8 = vmov 1.0|1.0   ;;  %v52_v16 = vld [vmem:[#allocation6] sm:$0x7] }
   0xf   :  { %v51_v15 = vld [vmem:[%s308_s2] sm:$0x7] }
  0x10   :  { %v68_v2 = vshrl.u32 %v67_v1, 7  ;;  %v53_v19 = vsub.f32 %v51_v15, %v52_v16  ;;  %v138_v38 = vld [vmem:[#allocation2] sm:$0x1] }
  0x12   :  { %v82_v4 = vadd.s32 112, %v68_v2  ;;  %v83_v5 = vadd.s32 120, %v68_v2  ;;  %v80_v6 = vadd.s32 96, %v68_v2  ;;  %v81_v7 = vadd.s32 104, %v68_v2 }
  0x13   :  { %v78_v9 = vadd.s32 80, %v68_v2  ;;  %v79_v10 = vadd.s32 88, %v68_v2  ;;  %v76_v11 = vadd.s32 64, %v68_v2  ;;  %v77_v12 = vadd.s32 72, %v68_v2 }
  0x14   :  { %vm99_vm0 = vcmp.eq.s32.totalorder %v82_v4, %v193_v3  ;;  %vm100_vm1 = vcmp.eq.s32.totalorder %v83_v5, %v193_v3  ;;  %vm97_vm3 = vcmp.eq.s32.totalorder %v80_v6, %v193_v3  ;;  %vm98_vm4 = vcmp.eq.s32.totalorder %v81_v7, %v193_v3 }
  0x15   :  { %vm173_vm2 = vmpackc.low %vm100_vm1, %vm99_vm0  ;;  %vm95_vm6 = vcmp.eq.s32.totalorder %v78_v9, %v193_v3  ;;  %vm96_vm7 = vcmp.eq.s32.totalorder %v79_v10, %v193_v3  ;;  %vm93_vm9 = vcmp.eq.s32.totalorder %v76_v11, %v193_v3  ;;  %vm94_vm10 = vcmp.eq.s32.totalorder %v77_v12, %v193_v3 }
  0x16   :  { %174 = vmatpush.bf16.xpose.msk.msra.mxu0 %vm173_vm2, %v248_v8  ;;  %vm175_vm5 = vmpackc.low %vm98_vm4, %vm97_vm3  ;;  %v74_v13 = vadd.s32 48, %v68_v2  ;;  %v75_v14 = vadd.s32 56, %v68_v2  ;;  %v72_v17 = vadd.s32 32, %v68_v2  ;;  %v73_v18 = vadd.s32 40, %v68_v2 }
  0x17   :  { %vm177_vm8 = vmpackc.low %vm96_vm7, %vm95_vm6  ;;  %v54_v20 = vmul.f32 %v53_v19, %v53_v19  ;;  %v70_v21 = vadd.s32 16, %v68_v2  ;;  %v71_v22 = vadd.s32 24, %v68_v2  ;;  %v69_v25 = vadd.s32 8, %v68_v2 }
  0x18   :  { %vm179_vm11 = vmpackc.low %vm94_vm10, %vm93_vm9  ;;  %vm91_vm12 = vcmp.eq.s32.totalorder %v74_v13, %v193_v3  ;;  %vm92_vm13 = vcmp.eq.s32.totalorder %v75_v14, %v193_v3  ;;  %vm89_vm15 = vcmp.eq.s32.totalorder %v72_v17, %v193_v3  ;;  %vm90_vm0 = vcmp.eq.s32.totalorder %v73_v18, %v193_v3 }
  0x19   :  { %vm181_vm14 = vmpackc.low %vm92_vm13, %vm91_vm12  ;;  %v55_v23 = vpack.c.bf16 %v54_v20, %v54_v20  ;;  %vm87_vm2 = vcmp.eq.s32.totalorder %v70_v21, %v193_v3  ;;  %vm88_vm3 = vcmp.eq.s32.totalorder %v71_v22, %v193_v3  ;;  %vm86_vm6 = vcmp.eq.s32.totalorder %v69_v25, %v193_v3 }
  0x1a   :  { %vm183_vm1 = vmpackc.low %vm90_vm0, %vm89_vm15  ;;  %vm139_vm9 = vcmask 1045504  }
  0x1b   :  { %v56_v24 = vunpack.c.l.bf16 %v55_v23  ;;  %vm185_vm4 = vmpackc.low %vm88_vm3, %vm87_vm2 }
  0x1d   :  { %v57_v26 = vsub.f32 %v54_v20, %v56_v24 }
  0x1e   :  { %176 = vmatpush.bf16.xpose.msk.msra.mxu0 %vm175_vm5, %v248_v8  ;;  %vm85_vm5 = vcmp.eq.s32.totalorder %v68_v2, %v193_v3 }
  0x1f   :  { %v59_v27 = vrot.slane %v57_v26, 5  ;;  %vm187_vm7 = vmpackc.low %vm86_vm6, %vm85_vm5 }
  0x26   :  { %178 = vmatpush.bf16.xpose.msk.msra.mxu0 %vm177_vm8, %v248_v8  ;;  %vm61_vm8 = vcmask 1042432  }
  0x27   :  { %v62_v28 = vsel %vm61_vm8, %v56_v24, %v59_v27 }
  0x28   :  { %v63_v29 = vpack.c.bf16 %v62_v28, %v62_v28 }
  0x2e   :  { %180 = vmatpush.bf16.xpose.msk.msra.mxu0 %vm179_vm11, %v248_v8 }
  0x36   :  { %182 = vmatpush.bf16.xpose.msk.msra.mxu0 %vm181_vm14, %v248_v8 }
  0x3e   :  { %184 = vmatpush.bf16.xpose.msk.msra.mxu0 %vm183_vm1, %v248_v8 }
  0x46   :  { %186 = vmatpush.bf16.xpose.msk.msra.mxu0 %vm185_vm4, %v248_v8 }
  0x4e   :  { %188 = vmatpush.bf16.xpose.msk.msra.mxu0 %vm187_vm7, %v248_v8 }
  0x55   :  { %133 = vmatmul.bf16.vlgmr.msra.gmra.mxu0 %v63_v29 }
  0xd2   :  { %v134_v30 = vpop.f32.mrf.mxu0 }
  0xd3   :  { %v140_v31 = vsel %vm139_vm9, %v134_v30, 0.0 }
  0xd4   :  { %v141_v32 = vrot.slane %v140_v31, 4 }
  0xd6   :  { %v142_v33 = vadd.f32 %v141_v32, %v140_v31 }
  0xd8   :  { %v143_v34 = vrot.slane %v142_v33, 2 }
  0xda   :  { %v144_v35 = vadd.f32 %v143_v34, %v142_v33  ;;  %v136_v36 = vpop.f32.mrf.mxu0 }
  0xdc   :  { %v145_v37 = vrot.slane %v144_v35, 1 }
  0xde   :  { %v146_v39 = vadd.f32 %v145_v37, %v144_v35 }
  0xe0   :  { %v147_v40 = vadd.f32 %v146_v39, %v138_v38 }
  0xe2   :  { %148 = vst [vmem:[#allocation2] sm:$0x1] %v147_v40 }
  0xe3 PF:  { %v153_v42 = vld [vmem:[%s311_s5] sm:$0x1]  ;;  %s163_s9 = sshll.u32 %s312_s6, 4  ;;  %s249_s10 = smov [#allocation9]   ;;  %s164_s9 = int_to_ptr.hbm [resolvable:$true] %s163_s9 }
  0xe4   :  { %s161_s11 = sshll.u32 %s249_s10, 4  ;;  %s162_s11 = int_to_ptr.vmem [resolvable:$true] %s161_s11 }
  0xe9   :  { %v152_v41 = vld [vmem:[#allocation2] sm:$0x1] }
  0xea   :  { %v154_v43 = vmul.f32 %v153_v42, %v152_v41 }
  0xec   :  { %155 = vst [vmem:[#allocation9] sm:$0x1] %v154_v43 }
  0xed   :  { %166 = dma.vmem_to_hbm [thread:$0]  %s162_s11, 16, %s164_s9, [#allocation8]  }
  0xee   :  { %244 = dma.done.wait [#allocation8], 16  }
  0xef   :  { %245 = vsyncadd [#allocation8], 4294967280 }
  0xf0   :  { %171 = vsyncpa [#allocation7], 1 }
  0xf1   :  { %172 = vsyncpa [#allocation8], 1 }

</bundles_post_ra>
